<compile_context>
chip_gen: v7x
topology: tpu7x:2x2x1
jax: 0.10.0
libtpu: 0.0.40
codegen_flags: <defaults>
</compile_context>

<pallas_src>
import functools

import jax
import jax.numpy as jnp
from jax.experimental import pallas as pl
from jax.experimental.pallas import tpu as pltpu

# ---------------- model hyperparameters (match the PyTorch module) -----------
D = 2          # input dimension of the domain
HDIM = 32      # hidden width (small test size)
DEPTH = 1      # number of hidden Linear layers after the first one
OUT = 1        # scalar PDE solution / multiplier output

# ---------------- TPU tiling --------------------------------------------------
LANE = 128
G = LANE // HDIM          # row-groups packed into the 128 lanes (4)
SEG = LANE // G           # lanes per group (32)
assert HDIM <= SEG and G * SEG == LANE
ROW_UNIT = 8 * G          # tm granularity: packed tile rows must be a sublane multiple
TM_MAX = 4096             # original rows per grid step at large N (packed tile 1024x128)


def _round_up(a, b):
    return ((a + b - 1) // b) * b


def _choose_tile(n):
    """(tm, steps): tm original rows/step (multiple of ROW_UNIT, <= ~TM_MAX);
    steps even (>=2) so the 'parallel' grid splits evenly across v7x's 2 TCs."""
    n_u = max(_round_up(n, ROW_UNIT), ROW_UNIT)
    steps = 2 * ((n_u + 2 * TM_MAX - 1) // (2 * TM_MAX))     # even, >= 2
    tm = _round_up((n_u + steps - 1) // steps, ROW_UNIT)
    return tm, steps


def _mlp_kernel(depth, kin, x_ref, w1_ref, b1_ref, wh_ref, bh_ref, wo_ref,
                bo_ref, o_ref):
    """Packed MLP forward for one tile: 4 row-groups live in the 128 lanes."""
    xp = x_ref[...]                                  # (TG, kin) with kin = G*d = 8
    # First layer directly in packed layout: kin rank-1 VPU broadcast FMAs
    # against the block-diagonal (kin, 128) weight.
    acc = xp[:, 0:1] * w1_ref[0:1, :]                # (TG,1)*(1,128) -> (TG,128)
    for k in range(1, kin):
        acc = acc + xp[:, k:k + 1] * w1_ref[k:k + 1, :]
    h = jnp.tanh(acc + b1_ref[...])
    # Hidden layers on the MXU against block-diagonal 128x128 weights (exact:
    # zero off-diagonal blocks keep the 4 groups independent).
    for i in range(depth):                           # static unroll (DEPTH=1)
        h = jnp.tanh(
            jnp.dot(h, wh_ref[i], preferred_element_type=jnp.float32)
            + bh_ref[i])
    # Output layer: packed (128, G) weight -> one scalar per row-group,
    # bias read as a scalar from SMEM.
    out = (jnp.dot(h, wo_ref[...], preferred_element_type=jnp.float32)
           + bo_ref[0, 0])
    o_ref[...] = out.astype(o_ref.dtype)             # (TG, G) store


def mlp_forward(x, params):
    """x: (N, D) float32 -> (N, 1) float32, identical semantics to MODEL.forward."""
    w1p, b1p, whp, bhp, wop, bop = params
    n, d = x.shape
    assert d == D
    tm, steps = _choose_tile(n)
    n_pad = tm * steps
    tg = tm // G                      # packed rows per grid step
    q = n_pad // G                    # total packed rows

    xf = x.astype(jnp.float32)
    if n_pad != n:                    # cheap: only d=2 columns, zero rows exact
        xf = jnp.zeros((n_pad, d), jnp.float32).at[:n].set(xf)
    # Pack G consecutive rows per packed row — a free row-major reshape.
    xp = xf.reshape(q, G * d)

    kernel = functools.partial(_mlp_kernel, DEPTH, G * d)

    # Cost estimate = what the packed kernel actually does.
    flops = 2 * q * (G * d * LANE + DEPTH * LANE * LANE + LANE * G)
    transcendentals = q * LANE * (1 + DEPTH)
    weight_bytes = 4 * (G * d * LANE + LANE + DEPTH * (LANE * LANE + LANE)
                        + LANE * G + 1)
    bytes_accessed = 4 * q * (G * d + G) + weight_bytes

    out = pl.pallas_call(
        kernel,
        out_shape=jax.ShapeDtypeStruct((q, G), jnp.float32),
        grid_spec=pltpu.PrefetchScalarGridSpec(
            num_scalar_prefetch=0,
            grid=(steps,),
            in_specs=[
                pl.BlockSpec((tg, G * d), lambda i: (i, 0)),          # packed x tile
                pl.BlockSpec((G * d, LANE), lambda i: (0, 0)),        # W1 (block-diag)
                pl.BlockSpec((1, LANE), lambda i: (0, 0)),            # b1 (replicated)
                pl.BlockSpec((DEPTH, LANE, LANE), lambda i: (0, 0, 0)),  # hidden Ws
                pl.BlockSpec((DEPTH, 1, LANE), lambda i: (0, 0, 0)),     # hidden bs
                pl.BlockSpec((LANE, G), lambda i: (0, 0)),            # W_out (packed)
                pl.BlockSpec(memory_space=pltpu.MemorySpace.SMEM),    # b_out scalar
            ],
            out_specs=pl.BlockSpec((tg, G), lambda i: (i, 0)),        # packed output
        ),
        compiler_params=pltpu.CompilerParams(
            dimension_semantics=("parallel",)),
        cost_estimate=pl.CostEstimate(
            flops=flops, transcendentals=transcendentals,
            bytes_accessed=bytes_accessed),
    )(xp, w1p, b1p, whp, bhp, wop, bop)

    # Unpack: (q, G) row-major is exactly (n_pad, 1) — free reshape.
    return out.reshape(n_pad, OUT)[:n]


# ---------------- deterministic parameter init (PyTorch-style uniform) -------
def init_params(key):
    ks = jax.random.split(key, 6)

    def lin(kw, kb, fan_in, fan_out):
        bound = 1.0 / jnp.sqrt(jnp.float32(fan_in))
        w = jax.random.uniform(kw, (fan_in, fan_out), jnp.float32, -bound, bound)
        b = jax.random.uniform(kb, (fan_out,), jnp.float32, -bound, bound)
        return w, b

    w1, b1 = lin(ks[0], ks[1], D, HDIM)

    whs, bhs = [], []
    hk = jax.random.split(ks[2], 2 * DEPTH)
    for i in range(DEPTH):
        w, b = lin(hk[2 * i], hk[2 * i + 1], HDIM, HDIM)
        whs.append(w)
        bhs.append(b)

    wo, bo = lin(ks[3], ks[4], HDIM, OUT)

    # ---- pack for the 4-group lane layout ------------------------------------
    # First layer: block-diagonal (G*D, 128); group g uses input cols
    # [g*D, (g+1)*D) and output lanes [g*SEG, g*SEG+HDIM).
    w1p = jnp.zeros((G * D, LANE), jnp.float32)
    b1p = jnp.zeros((1, LANE), jnp.float32)
    whp = jnp.zeros((DEPTH, LANE, LANE), jnp.float32)
    bhp = jnp.zeros((DEPTH, 1, LANE), jnp.float32)
    wop = jnp.zeros((LANE, G), jnp.float32)
    for g in range(G):
        lo = g * SEG
        w1p = w1p.at[g * D:(g + 1) * D, lo:lo + HDIM].set(w1)
        b1p = b1p.at[0, lo:lo + HDIM].set(b1)
        wop = wop.at[lo:lo + HDIM, g].set(wo[:, 0])
        for i in range(DEPTH):
            whp = whp.at[i, lo:lo + HDIM, lo:lo + HDIM].set(whs[i])
            bhp = bhp.at[i, 0, lo:lo + HDIM].set(bhs[i])
    bop = bo.reshape(1, 1)

    packed = (w1p, b1p, whp, bhp, wop, bop)
    raw = (w1, b1, whs, bhs, wo, bo)
    return packed, raw


def reference_forward(x, raw):
    w1, b1, whs, bhs, wo, bo = raw
    h = jnp.tanh(x @ w1 + b1)
    for w, b in zip(whs, bhs):
        h = jnp.tanh(h @ w + b)
    return h @ wo + bo


if __name__ == "__main__":
    key = jax.random.PRNGKey(0)
    kx, kp = jax.random.split(key)

    N = 16
    x = jax.random.normal(kx, (N, D), jnp.float32)

    packed, raw = init_params(kp)

    out = mlp_forward(x, packed)
    out = jax.block_until_ready(out)

    ref = reference_forward(x, raw)
    assert out.shape == (N, OUT), out.shape
    assert jnp.allclose(out, ref, atol=1e-5, rtol=1e-5), (
        float(jnp.max(jnp.abs(out - ref))))

    print("KERNEL_OK")
</pallas_src>

<mosaic_0001>
module attributes {stable_mosaic.version = 11 : i64} {
  func.func @_mlp_kernel(%arg0: i32, %arg1: memref<8x8xf32, #tpu.memory_space<vmem>>, %arg2: memref<8x128xf32, #tpu.memory_space<vmem>>, %arg3: memref<1x128xf32, #tpu.memory_space<vmem>>, %arg4: memref<1x128x128xf32, #tpu.memory_space<vmem>>, %arg5: memref<1x1x128xf32, #tpu.memory_space<vmem>>, %arg6: memref<128x4xf32, #tpu.memory_space<vmem>>, %arg7: memref<1x1xf32, #tpu.memory_space<smem>>, %arg8: memref<8x4xf32, #tpu.memory_space<vmem>>) attributes {dimension_semantics = [#tpu.dimension_semantics<parallel>], iteration_bounds = array<i64: 2>, scalar_prefetch = 0 : i64, scratch_operands = 0 : i64, tpu.core_type = #tpu.core_type<tc>, window_params = [{transform_indices = @transform_0, window_bounds = array<i64: 8, 8>}, {pipeline_mode = #tpu.pipeline_mode<synchronous>, transform_indices = @transform_1, window_bounds = array<i64: 8, 128>}, {pipeline_mode = #tpu.pipeline_mode<synchronous>, transform_indices = @transform_2, window_bounds = array<i64: 1, 128>}, {pipeline_mode = #tpu.pipeline_mode<synchronous>, transform_indices = @transform_3, window_bounds = array<i64: 1, 128, 128>}, {pipeline_mode = #tpu.pipeline_mode<synchronous>, transform_indices = @transform_4, window_bounds = array<i64: 1, 1, 128>}, {pipeline_mode = #tpu.pipeline_mode<synchronous>, transform_indices = @transform_5, window_bounds = array<i64: 128, 4>}, {transform_indices = @transform_6, window_bounds = array<i64: 1, 1>}, {transform_indices = @transform_7, window_bounds = array<i64: 8, 4>}]} {
    %c0 = arith.constant 0 : index
    %c0_0 = arith.constant 0 : index
    %0 = vector.load %arg1[%c0, %c0_0] : memref<8x8xf32, #tpu.memory_space<vmem>>, vector<8x8xf32>
    %1 = vector.extract_strided_slice %0 {offsets = [0, 0], sizes = [8, 1], strides = [1, 1]} : vector<8x8xf32> to vector<8x1xf32>
    %c0_1 = arith.constant 0 : index
    %c0_2 = arith.constant 0 : index
    %2 = vector.load %arg2[%c0_1, %c0_2] : memref<8x128xf32, #tpu.memory_space<vmem>>, vector<1x128xf32>
    %3 = vector.broadcast %1 : vector<8x1xf32> to vector<8x128xf32>
    %4 = vector.broadcast %2 : vector<1x128xf32> to vector<8x128xf32>
    %5 = arith.mulf %3, %4 : vector<8x128xf32>
    %6 = vector.extract_strided_slice %0 {offsets = [0, 1], sizes = [8, 1], strides = [1, 1]} : vector<8x8xf32> to vector<8x1xf32>
    %c1 = arith.constant 1 : index
    %c0_3 = arith.constant 0 : index
    %7 = vector.load %arg2[%c1, %c0_3] : memref<8x128xf32, #tpu.memory_space<vmem>>, vector<1x128xf32>
    %8 = vector.broadcast %6 : vector<8x1xf32> to vector<8x128xf32>
    %9 = vector.broadcast %7 : vector<1x128xf32> to vector<8x128xf32>
    %10 = arith.mulf %8, %9 : vector<8x128xf32>
    %11 = arith.addf %5, %10 : vector<8x128xf32>
    %12 = vector.extract_strided_slice %0 {offsets = [0, 2], sizes = [8, 1], strides = [1, 1]} : vector<8x8xf32> to vector<8x1xf32>
    %c2 = arith.constant 2 : index
    %c0_4 = arith.constant 0 : index
    %13 = vector.load %arg2[%c2, %c0_4] : memref<8x128xf32, #tpu.memory_space<vmem>>, vector<1x128xf32>
    %14 = vector.broadcast %12 : vector<8x1xf32> to vector<8x128xf32>
    %15 = vector.broadcast %13 : vector<1x128xf32> to vector<8x128xf32>
    %16 = arith.mulf %14, %15 : vector<8x128xf32>
    %17 = arith.addf %11, %16 : vector<8x128xf32>
    %18 = vector.extract_strided_slice %0 {offsets = [0, 3], sizes = [8, 1], strides = [1, 1]} : vector<8x8xf32> to vector<8x1xf32>
    %c3 = arith.constant 3 : index
    %c0_5 = arith.constant 0 : index
    %19 = vector.load %arg2[%c3, %c0_5] : memref<8x128xf32, #tpu.memory_space<vmem>>, vector<1x128xf32>
    %20 = vector.broadcast %18 : vector<8x1xf32> to vector<8x128xf32>
    %21 = vector.broadcast %19 : vector<1x128xf32> to vector<8x128xf32>
    %22 = arith.mulf %20, %21 : vector<8x128xf32>
    %23 = arith.addf %17, %22 : vector<8x128xf32>
    %24 = vector.extract_strided_slice %0 {offsets = [0, 4], sizes = [8, 1], strides = [1, 1]} : vector<8x8xf32> to vector<8x1xf32>
    %c4 = arith.constant 4 : index
    %c0_6 = arith.constant 0 : index
    %25 = vector.load %arg2[%c4, %c0_6] : memref<8x128xf32, #tpu.memory_space<vmem>>, vector<1x128xf32>
    %26 = vector.broadcast %24 : vector<8x1xf32> to vector<8x128xf32>
    %27 = vector.broadcast %25 : vector<1x128xf32> to vector<8x128xf32>
    %28 = arith.mulf %26, %27 : vector<8x128xf32>
    %29 = arith.addf %23, %28 : vector<8x128xf32>
    %30 = vector.extract_strided_slice %0 {offsets = [0, 5], sizes = [8, 1], strides = [1, 1]} : vector<8x8xf32> to vector<8x1xf32>
    %c5 = arith.constant 5 : index
    %c0_7 = arith.constant 0 : index
    %31 = vector.load %arg2[%c5, %c0_7] : memref<8x128xf32, #tpu.memory_space<vmem>>, vector<1x128xf32>
    %32 = vector.broadcast %30 : vector<8x1xf32> to vector<8x128xf32>
    %33 = vector.broadcast %31 : vector<1x128xf32> to vector<8x128xf32>
    %34 = arith.mulf %32, %33 : vector<8x128xf32>
    %35 = arith.addf %29, %34 : vector<8x128xf32>
    %36 = vector.extract_strided_slice %0 {offsets = [0, 6], sizes = [8, 1], strides = [1, 1]} : vector<8x8xf32> to vector<8x1xf32>
    %c6 = arith.constant 6 : index
    %c0_8 = arith.constant 0 : index
    %37 = vector.load %arg2[%c6, %c0_8] : memref<8x128xf32, #tpu.memory_space<vmem>>, vector<1x128xf32>
    %38 = vector.broadcast %36 : vector<8x1xf32> to vector<8x128xf32>
    %39 = vector.broadcast %37 : vector<1x128xf32> to vector<8x128xf32>
    %40 = arith.mulf %38, %39 : vector<8x128xf32>
    %41 = arith.addf %35, %40 : vector<8x128xf32>
    %42 = vector.extract_strided_slice %0 {offsets = [0, 7], sizes = [8, 1], strides = [1, 1]} : vector<8x8xf32> to vector<8x1xf32>
    %c7 = arith.constant 7 : index
    %c0_9 = arith.constant 0 : index
    %43 = vector.load %arg2[%c7, %c0_9] : memref<8x128xf32, #tpu.memory_space<vmem>>, vector<1x128xf32>
    %44 = vector.broadcast %42 : vector<8x1xf32> to vector<8x128xf32>
    %45 = vector.broadcast %43 : vector<1x128xf32> to vector<8x128xf32>
    %46 = arith.mulf %44, %45 : vector<8x128xf32>
    %47 = arith.addf %41, %46 : vector<8x128xf32>
    %c0_10 = arith.constant 0 : index
    %c0_11 = arith.constant 0 : index
    %48 = vector.load %arg3[%c0_10, %c0_11] : memref<1x128xf32, #tpu.memory_space<vmem>>, vector<1x128xf32>
    %49 = vector.broadcast %48 : vector<1x128xf32> to vector<8x128xf32>
    %50 = arith.addf %47, %49 : vector<8x128xf32>
    %51 = math.tanh %50 : vector<8x128xf32>
    %c0_12 = arith.constant 0 : index
    %c0_13 = arith.constant 0 : index
    %c0_14 = arith.constant 0 : index
    %52 = vector.load %arg4[%c0_12, %c0_13, %c0_14] : memref<1x128x128xf32, #tpu.memory_space<vmem>>, vector<1x128x128xf32>
    %53 = vector.shape_cast %52 : vector<1x128x128xf32> to vector<128x128xf32>
    %cst = arith.constant dense<0.000000e+00> : vector<8x128xf32>
    %54 = tpu.matmul %51, %53, %cst {dimension_numbers = #tpu.dot_dimension_numbers<[1], [0], [0], [1], [0, 0, 1, 1], [], []>} : vector<8x128xf32>, vector<128x128xf32>, vector<8x128xf32> -> vector<8x128xf32>
    %c0_15 = arith.constant 0 : index
    %c0_16 = arith.constant 0 : index
    %c0_17 = arith.constant 0 : index
    %55 = vector.load %arg5[%c0_15, %c0_16, %c0_17] : memref<1x1x128xf32, #tpu.memory_space<vmem>>, vector<1x1x128xf32>
    %56 = vector.shape_cast %55 : vector<1x1x128xf32> to vector<1x128xf32>
    %57 = vector.broadcast %56 : vector<1x128xf32> to vector<8x128xf32>
    %58 = arith.addf %54, %57 : vector<8x128xf32>
    %59 = math.tanh %58 : vector<8x128xf32>
    %c0_18 = arith.constant 0 : index
    %c0_19 = arith.constant 0 : index
    %60 = vector.load %arg6[%c0_18, %c0_19] : memref<128x4xf32, #tpu.memory_space<vmem>>, vector<128x4xf32>
    %cst_20 = arith.constant dense<0.000000e+00> : vector<8x4xf32>
    %61 = tpu.matmul %59, %60, %cst_20 {dimension_numbers = #tpu.dot_dimension_numbers<[1], [0], [0], [1], [0, 0, 1, 1], [], []>} : vector<8x128xf32>, vector<128x4xf32>, vector<8x4xf32> -> vector<8x4xf32>
    %c0_21 = arith.constant 0 : index
    %c0_22 = arith.constant 0 : index
    %62 = memref.load %arg7[%c0_21, %c0_22] : memref<1x1xf32, #tpu.memory_space<smem>>
    %63 = vector.broadcast %62 : f32 to vector<8x4xf32>
    %64 = arith.addf %61, %63 : vector<8x4xf32>
    %c0_23 = arith.constant 0 : index
    %c0_24 = arith.constant 0 : index
    %65 = vector.load %arg8[%c0_23, %c0_24] : memref<8x4xf32, #tpu.memory_space<vmem>>, vector<8x4xf32>
    tpu.vector_store %arg8[%c0_23, %c0_24], %64 {strides = array<i32>} : memref<8x4xf32, #tpu.memory_space<vmem>>, vector<8x4xf32>,
    return
  }
  func.func @transform_0(%arg0: i32) -> (i32, i32) {
    %c0_i32 = arith.constant 0 : i32
    %c0_i32_0 = arith.constant 0 : i32
    return %arg0, %c0_i32 : i32, i32
  }
  func.func @transform_1(%arg0: i32) -> (i32, i32) {
    %c0_i32 = arith.constant 0 : i32
    %c0_i32_0 = arith.constant 0 : i32
    %c0_i32_1 = arith.constant 0 : i32
    return %c0_i32, %c0_i32_0 : i32, i32
  }
  func.func @transform_2(%arg0: i32) -> (i32, i32) {
    %c0_i32 = arith.constant 0 : i32
    %c0_i32_0 = arith.constant 0 : i32
    %c0_i32_1 = arith.constant 0 : i32
    return %c0_i32, %c0_i32_0 : i32, i32
  }
  func.func @transform_3(%arg0: i32) -> (i32, i32, i32) {
    %c0_i32 = arith.constant 0 : i32
    %c0_i32_0 = arith.constant 0 : i32
    %c0_i32_1 = arith.constant 0 : i32
    %c0_i32_2 = arith.constant 0 : i32
    return %c0_i32, %c0_i32_0, %c0_i32_1 : i32, i32, i32
  }
  func.func @transform_4(%arg0: i32) -> (i32, i32, i32) {
    %c0_i32 = arith.constant 0 : i32
    %c0_i32_0 = arith.constant 0 : i32
    %c0_i32_1 = arith.constant 0 : i32
    %c0_i32_2 = arith.constant 0 : i32
    return %c0_i32, %c0_i32_0, %c0_i32_1 : i32, i32, i32
  }
  func.func @transform_5(%arg0: i32) -> (i32, i32) {
    %c0_i32 = arith.constant 0 : i32
    %c0_i32_0 = arith.constant 0 : i32
    %c0_i32_1 = arith.constant 0 : i32
    return %c0_i32, %c0_i32_0 : i32, i32
  }
  func.func @transform_6(%arg0: i32) -> (i32, i32) {
    %c0_i32 = arith.constant 0 : i32
    %c0_i32_0 = arith.constant 0 : i32
    %c0_i32_1 = arith.constant 0 : i32
    return %c0_i32, %c0_i32_0 : i32, i32
  }
  func.func @transform_7(%arg0: i32) -> (i32, i32) {
    %c0_i32 = arith.constant 0 : i32
    %c0_i32_0 = arith.constant 0 : i32
    return %arg0, %c0_i32 : i32, i32
  }
}

</mosaic_0001>

<bundles_post_ra>
// kernel: tpu_custom_call.1
= control target key start
LH: loop header
LB: loop body
LE: loop exit
PB: predicated region body
PF: predicated region fallthrough
CT: control target
= control target key end

     0   :  { %s875_s26 = smov 0   ;;  %s1041_s0 = inlined_call_operand.vmem [shape: f32[16,8], index: 0, kind: input, shape index: {}]   ;;  %s1042_s1 = inlined_call_operand.vmem [shape: f32[8,128], index: 1, kind: input, shape index: {}]   ;;  %s1043_s2 = inlined_call_operand.vmem [shape: f32[1,128], index: 2, kind: input, shape index: {}]   ;;  %s1044_s3 = inlined_call_operand.vmem [shape: f32[1,128,128], index: 3, kind: input, shape index: {}]   ;;  %s1045_s4 = inlined_call_operand.vmem [shape: f32[1,1,128], index: 4, kind: input, shape index: {}]   ;;  %s1046_s5 = inlined_call_operand.vmem [shape: f32[128,4], index: 5, kind: input, shape index: {}]   ;;  %s1047_s6 = inlined_call_operand.<no memory space> [shape: f32[1,1], index: 6, kind: input, shape index: {}]   ;;  %s1048_s7 = inlined_call_operand.vmem [shape: f32[16,4], index: 7, kind: output, shape index: {}]  }
   0x1   :  { %12 = sst [smem:[#allocation2]] %s1047_s6 }
   0x2 LB: > { %s610_s27 = sadd.s32 4294967295, %s819_s26   ;;  %p614_p0 = scmp.ge.s32.totalorder %s819_s26, 1  ;;  %s819_s26 = sphi %s875_s26, %s18_s26  }
   0x3   : > { %p237_p1 = scmp.lt.s32.totalorder %s819_s26, 3 }
   0x5   : > { %p238_p2 = pnand %p614_p0, %p237_p1 }
   0x6   : > { %p267_p3 = scmp.lt.s32.totalorder (!%p238_p2), %s610_s27, 1  ;;  %v821_v0 = vmov (!%p238_p2), 2   ;;  %v822_v1 = vmov (!%p238_p2), 0   ;;  %v373_v3 = vld [vmem:[%s1044_s3] sm:$0xff] (!%p238_p2)  ;;  %v374_v4 = vld [vmem:[%s1044_s3 + $0x8] sm:$0xff] (!%p238_p2)  ;;  %v823_v5 = vmov (!%p238_p2), 3  }
   0x7   : > { %241 = sbr.rel (%p238_p2) target bundleno = 623 (0x26f), region = 48  ;;  %802 = vset.pattern.permute.xlu1 (!%p238_p2), %v821_v0  ;;  %800 = vset.pattern.permute.xlu0 (!%p238_p2), %v822_v1  ;;  %v824_v6 = vmov (!%p238_p2), 1   ;;  %v734_v7 = vpack.c.bf16 (!%p238_p2), %v374_v4, %v373_v3  ;;  %v825_v8 = vmov (!%p238_p2), 0.0|0.0   ;;  %v375_v9 = vld [vmem:[%s1044_s3 + $0x10] sm:$0xff] (!%p238_p2)  ;;  %v376_v10 = vld [vmem:[%s1044_s3 + $0x18] sm:$0xff] (!%p238_p2)  ;;  %v826_v12 = vmov (!%p238_p2), 4  }
   0x8   : > { %733 = vmatprep.subr.bf16.mxu0 (!%p238_p2), %v825_v8  ;;  %757 = vmatprep.subr.bf16.mxu1 (!%p238_p2), %v825_v8  ;;  %v737_v11 = vpack.c.bf16 (!%p238_p2), %v376_v10, %v375_v9  ;;  %v827_v13 = vmov (!%p238_p2), 5   ;;  %v377_v14 = vld [vmem:[%s1044_s3 + $0x20] sm:$0xff] (!%p238_p2)  ;;  %v378_v15 = vld [vmem:[%s1044_s3 + $0x28] sm:$0xff] (!%p238_p2)  ;;  %v828_v17 = vmov (!%p238_p2), 6   ;;  %v829_v18 = vmov (!%p238_p2), 7   ;;  %v379_v19 = vld [vmem:[%s1044_s3 + $0x30] sm:$0xff] (!%p238_p2) }
   0x9   : > { %735 = vmatpush3.bf16.msra.mxu0 (!%p238_p2), %v734_v7  ;;  %v740_v16 = vpack.c.bf16 (!%p238_p2), %v378_v15, %v377_v14  ;;  %v380_v20 = vld [vmem:[%s1044_s3 + $0x38] sm:$0xff] (!%p238_p2)  ;;  %v381_v22 = vld [vmem:[%s1044_s3 + $0x40] sm:$0xff] (!%p238_p2)  ;;  %v382_v23 = vld [vmem:[%s1044_s3 + $0x48] sm:$0xff] (!%p238_p2)  ;;  %vm830_vm0 = vmmov (!%p238_p2), 0   ;;  %v831_v31 = vmov (!%p238_p2), 0.0   ;;  %s483_s8 = sld [smem:[#allocation2]] (!%p238_p2) }
   0xa   : > { %736 = vmatprep.subr.bf16.mxu0 (!%p238_p2), %v825_v8  ;;  %v743_v21 = vpack.c.bf16 (!%p238_p2), %v380_v20, %v379_v19  ;;  %v746_v24 = vpack.c.bf16 (!%p238_p2), %v382_v23, %v381_v22  ;;  %v383_v25 = vld [vmem:[%s1044_s3 + $0x50] sm:$0xff] (!%p238_p2)  ;;  %v384_v26 = vld [vmem:[%s1044_s3 + $0x58] sm:$0xff] (!%p238_p2)  ;;  %v385_v28 = vld [vmem:[%s1044_s3 + $0x60] sm:$0xff] (!%p238_p2)  ;;  %695 = vmatprep.mubr.msk.f32.mxu0 (!%p238_p2), %vm830_vm0, %v831_v31  ;;  %vm555_vm1 = vcmask (!%p238_p2), 31744  }
   0xb   : > { %v749_v27 = vpack.c.bf16 (!%p238_p2), %v384_v26, %v383_v25  ;;  %v386_v29 = vld [vmem:[%s1044_s3 + $0x68] sm:$0xff] (!%p238_p2)  ;;  %v387_v32 = vld [vmem:[%s1044_s3 + $0x70] sm:$0xff] (!%p238_p2)  ;;  %v388_v33 = vld [vmem:[%s1044_s3 + $0x78] sm:$0xff] (!%p238_p2)  ;;  %730 = vmatprep.mubr.msk.f32.mxu1 (!%p238_p2), %vm830_vm0, %v831_v31 }
   0xc   : > { %v752_v30 = vpack.c.bf16 (!%p238_p2), %v386_v29, %v385_v28  ;;  %v755_v34 = vpack.c.bf16 (!%p238_p2), %v388_v33, %v387_v32  ;;  %v467_v35 = vld [vmem:[%s1046_s5] sm:$0xff] (!%p238_p2)  ;;  %v468_v36 = vld [vmem:[%s1046_s5 + $0x8] sm:$0xff] (!%p238_p2)  ;;  %v469_v37 = vld [vmem:[%s1046_s5 + $0x10] sm:$0xff] (!%p238_p2) }
   0xd   : > { %738 = vmatpush3.bf16.msra.mxu0 (!%p238_p2), %v737_v11  ;;  %v758_v38 = vpack.c.bf16 (!%p238_p2), %v468_v36, %v467_v35  ;;  %v470_v39 = vld [vmem:[%s1046_s5 + $0x18] sm:$0xff] (!%p238_p2)  ;;  %v471_v41 = vld [vmem:[%s1046_s5 + $0x20] sm:$0xff] (!%p238_p2)  ;;  %v472_v42 = vld [vmem:[%s1046_s5 + $0x28] sm:$0xff] (!%p238_p2) }
   0xe   : > { %s1050_s27 = smov (!%p267_p3, %s610_s27), 1  ;;  %739 = vmatprep.subr.bf16.mxu0 %v825_v8  ;;  %v761_v40 = vpack.c.bf16 %v470_v39, %v469_v37  ;;  %v764_v43 = vpack.c.bf16 %v472_v42, %v471_v41  ;;  %v473_v44 = vld [vmem:[%s1046_s5 + $0x30] sm:$0xff]  ;;  %v474_v45 = vld [vmem:[%s1046_s5 + $0x38] sm:$0xff]  ;;  %v475_v47 = vld [vmem:[%s1046_s5 + $0x40] sm:$0xff] }
   0xf   : > { %s615_s6 = sshll.u32 %s1050_s27, 3  ;;  %759 = vmatpush3.bf16.msra.mxu1 %v758_v38  ;;  %v767_v46 = vpack.c.bf16 %v474_v45, %v473_v44  ;;  %v476_v48 = vld [vmem:[%s1046_s5 + $0x48] sm:$0xff]  ;;  %v617_v52 = vld [vmem:[%s1042_s1] ss:$0 sm:$0xff]  ;;  %v618_v53 = vld [vmem:[%s1042_s1 + $0x1] ss:$0 sm:$0xff]  ;;  %v484_v35 = vstv %s483_s8 }
  0x10   : > { %s270_s30 = scalar_lea.vmem %s1041_s0, %s615_s6  ;;  %760 = vmatprep.subr.bf16.mxu1 %v825_v8  ;;  %v770_v49 = vpack.c.bf16 %v476_v48, %v475_v47  ;;  %v619_v54 = vld [vmem:[%s1042_s1 + $0x2] ss:$0 sm:$0xff]  ;;  %v620_v59 = vld [vmem:[%s1042_s1 + $0x3] ss:$0 sm:$0xff]  ;;  %v621_v62 = vld [vmem:[%s1042_s1 + $0x4] ss:$0 sm:$0xff]  ;;  %s274_s11 = scalar_lea.vmem %s1048_s7, %s615_s6 }
  0x11   : > { %v275_v2 = vld [vmem:[%s270_s30] sm:$0xff]  ;;  %741 = vmatpush3.bf16.msra.mxu0 %v740_v16  ;;  %v478_v22 = vld [vmem:[%s1046_s5 + $0x58] sm:$0xff]  ;;  %v480_v25 = vld [vmem:[%s1046_s5 + $0x68] sm:$0xff] }
  0x12   : > { %300 = vperm.xlu1 %802, %v275_v2   ;;  %279 = vperm.xlu0 %800, %v275_v2   ;;  %v623_v9 = vld [vmem:[%s1042_s1 + $0x6] ss:$0 sm:$0xff]  ;;  %v482_v28 = vld [vmem:[%s1046_s5 + $0x78] sm:$0xff] }
  0x13   : > { %742 = vmatprep.subr.bf16.mxu0 %v825_v8  ;;  %762 = vmatpush3.bf16.msra.mxu1 %v761_v40 }
  0x14   : > { %763 = vmatprep.subr.bf16.mxu1 %v825_v8 }
  0x15   : > { %744 = vmatpush3.bf16.msra.mxu0 %v743_v21  ;;  %v477_v21 = vld [vmem:[%s1046_s5 + $0x50] sm:$0xff] }
  0x16   : > { %803 = vset.pattern.permute.xlu1 %v823_v5  ;;  %801 = vset.pattern.permute.xlu0 %v824_v6  ;;  %v773_v23 = vpack.c.bf16 %v478_v22, %v477_v21 }
  0x17   : > { %311 = vperm.xlu1 %803, %v275_v2   ;;  %289 = vperm.xlu0 %801, %v275_v2  }
  0x18   : > { %745 = vmatprep.subr.bf16.mxu0 %v825_v8  ;;  %765 = vmatpush3.bf16.msra.mxu1 %v764_v43 }
  0x19   : > { %747 = vmatpush3.bf16.msra.mxu0 %v746_v24  ;;  %766 = vmatprep.subr.bf16.mxu1 %v825_v8  ;;  %v479_v24 = vld [vmem:[%s1046_s5 + $0x60] sm:$0xff] }
  0x1a   : > { %748 = vmatprep.subr.bf16.mxu0 %v825_v8  ;;  %v776_v26 = vpack.c.bf16 %v480_v25, %v479_v24 }
  0x1b   : > { %804 = vset.pattern.permute.xlu1 %v826_v12  ;;  %805 = vset.pattern.permute.xlu0 %v827_v13  ;;  %v624_v13 = vld [vmem:[%s1042_s1 + $0x7] ss:$0 sm:$0xff] }
  0x1c   : > { %322 = vperm.xlu1 %804, %v275_v2   ;;  %333 = vperm.xlu0 %805, %v275_v2  }
  0x1d   : > { %750 = vmatpush3.bf16.msra.mxu0 %v749_v27  ;;  %768 = vmatpush3.bf16.msra.mxu1 %v767_v46  ;;  %v481_v27 = vld [vmem:[%s1046_s5 + $0x70] sm:$0xff] }
  0x1e   : > { %751 = vmatprep.subr.bf16.mxu0 %v825_v8  ;;  %769 = vmatprep.subr.bf16.mxu1 %v825_v8  ;;  %v779_v29 = vpack.c.bf16 %v482_v28, %v481_v27 }
  0x20   : > { %806 = vset.pattern.permute.xlu1 %v828_v17  ;;  %808 = vset.pattern.permute.xlu0 %v829_v18  ;;  %v625_v17 = vld [vmem:[%s1043_s2] ss:$0 sm:$0xff] }
  0x21   : > { %344 = vperm.xlu1 %806, %v275_v2   ;;  %753 = vmatpush3.bf16.msra.mxu0 %v752_v30  ;;  %v626_v30 = vld [vmem:[%s1045_s4] ss:$0 sm:$0xff] }
  0x22   : > { %754 = vmatprep.subr.bf16.mxu0 %v825_v8  ;;  %771 = vmatpush3.bf16.msra.mxu1 %v770_v49 }
  0x23   : > { %772 = vmatprep.subr.bf16.mxu1 %v825_v8 }
  0x25   : > { %807 = vset.pattern.permute.xlu1 %v829_v18  ;;  %756 = vmatpush3.bf16.msra.mxu0 %v755_v34 }
  0x26   : > { %355 = vperm.xlu1 %807, %v275_v2   ;;  %v622_v2 = vld [vmem:[%s1042_s1 + $0x5] ss:$0 sm:$0xff]  ;;  %774 = vmatpush3.bf16.msra.mxu1 %v773_v23 }
  0x27   : > { %775 = vmatprep.subr.bf16.mxu1 %v825_v8 }
  0x2a   : > { %777 = vmatpush3.bf16.msra.mxu1 %v776_v26 }
  0x2b   : > { %778 = vmatprep.subr.bf16.mxu1 %v825_v8 }
  0x2e   : > { %780 = vmatpush3.bf16.msra.mxu1 %v779_v29 }
  0x91   : > { %v301_v50 = vpop.permute.xlu1 %300  ;;  %v280_v51 = vpop.permute.xlu0 %279 }
  0x92   : > { %v286_v57 = vmul.f32 %v617_v52, %v280_v51  ;;  %v307_v60 = vmul.f32 %v619_v54, %v301_v50 }
  0x96   : > { %v312_v55 = vpop.permute.xlu1 %311  ;;  %v290_v56 = vpop.permute.xlu0 %289 }
  0x97   : > { %v296_v58 = vmul.f32 %v618_v53, %v290_v56  ;;  %v318_v63 = vmul.f32 %v620_v59, %v312_v55 }
  0x99   : > { %v297_v61 = vadd.f32 %v296_v58, %v286_v57 }
  0x9b   : > { %v308_v0 = vadd.f32 %v307_v60, %v297_v61  ;;  %v323_v1 = vpop.permute.xlu1 %322  ;;  %v334_v3 = vpop.permute.xlu0 %333 }
  0x9c   : > { %v329_v4 = vmul.f32 %v621_v62, %v323_v1  ;;  %v340_v6 = vmul.f32 %v622_v2, %v334_v3 }
  0x9d   : > { %v319_v5 = vadd.f32 %v318_v63, %v308_v0 }
  0x9f   : > { %v330_v7 = vadd.f32 %v329_v4, %v319_v5 }
  0xa0   : > { %v345_v10 = vpop.permute.xlu1 %344 }
  0xa1   : > { %v341_v11 = vadd.f32 %v340_v6, %v330_v7  ;;  %v351_v12 = vmul.f32 %v623_v9, %v345_v10 }
  0xa3   : > { %v352_v15 = vadd.f32 %v351_v12, %v341_v11 }
  0xa5   : > { %v356_v14 = vpop.permute.xlu1 %355 }
  0xa6   : > { %v362_v16 = vmul.f32 %v624_v13, %v356_v14 }
  0xa8   : > { %v363_v18 = vadd.f32 %v362_v16, %v352_v15 }
  0xaa   : > { %v371_v19 = vadd.f32 %v625_v17, %v363_v18 }
  0xac   : > { %809 = vtanh.f32 %v371_v19 }
  0xb6   : > { %v810_v20 = vpop.eup %809 }
  0xb7   : > { %696 = vmatmul.mubr.f32.vlgmr.msra.gmra.mrb[0].mxu0 %v810_v20 }
 0x18a   : > { %v462_v31 = vpop.f32.mrb[0].mxu0 }
 0x18b   : > { %v463_v32 = vadd.f32 %v626_v30, %v462_v31  ;;  %v697_v33 = vpop.f32.mrb[1].mxu0 }
 0x18d   : > { %811 = vtanh.f32 %v463_v32 }
 0x197   : > { %v812_v34 = vpop.eup %811 }
 0x198   : > { %731 = vmatmul.mubr.f32.vlgmr.msra.gmra.mrb[0].mxu1 %v812_v34 }
 0x26b   : > { %v551_v36 = vpop.f32.mrb[0].mxu1 }
 0x26c   : > { %v552_v8 = vadd.f32 %v551_v36, %v484_v35  ;;  %v732_v37 = vpop.f32.mrb[1].mxu1 }
 0x26e   : > { %556 = vst.msk [vmem:[%s274_s11] sm:$0xff] %vm555_vm1, %v552_v8 }
 0x26f PF: > { %s18_s26 = sadd.s32 1, %s819_s26  }
 0x270   : > { %p15_p4 = scmp.ge.s32.totalorder %s18_s26, 4  }
 0x272   :  { %17 = sbr.rel (!%p15_p4) target bundleno = 2 (0x2), region = 78 }

</bundles_post_ra>
